<compile_context>
chip_gen: v7x
topology: tpu7x:2x2x1
jax: 0.10.0
libtpu: 0.0.40
codegen_flags: <defaults>
</compile_context>

<pallas_src>
import jax
import jax.numpy as jnp
from jax.experimental import pallas as pl
from jax.experimental.pallas import tpu as pltpu


def _lstm_ic50_kernel(pg_ref, whh_ref, w1_ref, b1t_ref, w2_ref, b2_ref, out_ref):
    """One batch tile: LSTM recurrence over T steps + transposed regressor head.

    pg_ref : (T, TB, 4H) f32  pre-gates = x @ W_ih^T + (b_ih + b_hh), with the
                              i/f/o columns pre-scaled by 0.5 (tanh-only gates).
    whh_ref: (H, 4H)     f32  W_hh^T with i/f/o columns pre-scaled by 0.5.
    w1_ref : (64, H)     f32
    b1t_ref: (64, 1)     f32
    w2_ref : (1, 64)     f32
    b2_ref : (1, 1)      f32
    out_ref: (1, TB)     f32  (batch on the lane axis -> dense store)
    """
    T, TB, _ = pg_ref.shape
    H = whh_ref.shape[0]

    whh = whh_ref[...]
    h = jnp.zeros((TB, H), jnp.float32)
    c = jnp.zeros((TB, H), jnp.float32)

    # Fully unrolled recurrence (T is a small compile-time constant): only the
    # (TB, H) x (H, 4H) matmul on h stays on the serial dependency chain; the
    # per-step pre-gates are sliced straight out of VMEM (never fully live).
    # TODO(synk): for large T switch to lax.fori_loop(..., unroll=True) over
    # time chunks (h/c in VMEM scratch) to bound vreg live ranges.
    for t in range(T):
        gates = pg_ref[t] + jnp.dot(h, whh, preferred_element_type=jnp.float32)
        # Single EUP pass: tanh over the whole (TB, 4H) vreg.  Because the
        # i/f/o pre-activations were pre-scaled by 0.5 at weight-prep time,
        # their sigmoids are recovered with a VPU affine:
        #   sigmoid(x) = 0.5 * tanh(x / 2) + 0.5
        th = jnp.tanh(gates)
        sg = 0.5 * th + 0.5
        i_g = sg[:, 0 * H:1 * H]
        f_g = sg[:, 1 * H:2 * H]
        g_g = th[:, 2 * H:3 * H]
        o_g = sg[:, 3 * H:4 * H]
        c = f_g * c + i_g * g_g
        h = o_g * jnp.tanh(c)

    # Regressor head, computed transposed so the output store is lane-dense:
    #   z^T = relu(W1 @ h^T + b1)   : (64, TB)
    #   y   = W2 @ z^T + b2         : (1, TB)
    zt = jax.lax.dot_general(w1_ref[...], h, (((1,), (1,)), ((), ())),
                             preferred_element_type=jnp.float32) + b1t_ref[...]
    zt = jnp.maximum(zt, 0.0)
    # TODO(synk): Dropout(p=0.3) is a no-op at inference; not applied here.
    y = jnp.dot(w2_ref[...], zt, preferred_element_type=jnp.float32) + b2_ref[...]
    out_ref[...] = y.astype(out_ref.dtype)


def _round_up(n, m):
    return (n + m - 1) // m * m


def _choose_tiling(B):
    """Pick (b_pad, tile_b, grid_b)."""
    if B <= 128:
        b_pad = _round_up(max(B, 8), 8)
        return b_pad, b_pad, 1
    # >= 2 tiles (so both v7x TensorCores get a batch tile), tile a multiple of
    # 128 (lane-dense output blocks), capped at 512 rows per tile.  Per-tile
    # VMEM stays tiny (pre-gates block ~4 MiB at tile_b=512, H=128, T=8).
    tile_b = min(512, 128 * max(1, (_round_up(B, 128) // 128) // 2))
    b_pad = _round_up(B, tile_b)
    return b_pad, tile_b, b_pad // tile_b


def prepare_params(w_ih, w_hh, b_ih, b_hh, w1, b1, w2, b2):
    """One-time (model-load) weight prep.

    Folds the x0.5 pre-scale of the i/f/o gate columns (tanh-only gate
    formulation) into W_ih^T, W_hh^T and the combined bias.  Everything stays
    f32 (accuracy on the recurrent path; matmuls are tiny).
    """
    H = w_hh.shape[1]
    col_scale = jnp.concatenate([
        jnp.full((H,), 0.5), jnp.full((H,), 0.5),   # i, f
        jnp.ones((H,)),                             # g (plain tanh)
        jnp.full((H,), 0.5),                        # o
    ]).astype(jnp.float32)
    return dict(
        wih_s=(jnp.transpose(w_ih) * col_scale).astype(jnp.float32),   # (D, 4H)
        whh_s=(jnp.transpose(w_hh) * col_scale).astype(jnp.float32),   # (H, 4H)
        b_s=((b_ih + b_hh) * col_scale).reshape(1, 1, 4 * H).astype(jnp.float32),
        w1=w1.astype(jnp.float32),                                      # (64, H)
        b1t=b1.reshape(-1, 1).astype(jnp.float32),                      # (64, 1)
        w2=w2.reshape(1, -1).astype(jnp.float32),                       # (1, 64)
        b2=b2.reshape(1, 1).astype(jnp.float32),                        # (1, 1)
    )


@jax.jit
def lstm_ic50_forward(x, params):
    """x: (B, T, D) float32, batch_first like PyTorch. Returns (B, 1) float32."""
    B, T, D = x.shape
    H = params["whh_s"].shape[0]
    b_pad, tile_b, grid_b = _choose_tiling(B)

    # Hoisted, lane-dense input projection (fused pad + transpose + matmul +
    # bias in one XLA op): (T, B_pad, 4H) pre-gates, i/f/o columns pre-halved.
    x_pad = jnp.pad(x.astype(jnp.float32), ((0, b_pad - B), (0, 0), (0, 0)))
    pregates = jnp.einsum('btd,dg->tbg', x_pad, params["wih_s"]) + params["b_s"]

    def rep(shape):
        # Whole-array block, replicated across the batch grid axis (weights
        # stay VMEM-resident; no re-DMA across grid steps).
        return pl.BlockSpec(shape, lambda b: (0,) * len(shape))

    out_row = pl.pallas_call(
        _lstm_ic50_kernel,
        out_shape=jax.ShapeDtypeStruct((1, b_pad), jnp.float32),
        grid=(grid_b,),
        in_specs=[
            pl.BlockSpec((T, tile_b, 4 * H), lambda b: (0, b, 0)),
            rep(params["whh_s"].shape),
            rep(params["w1"].shape),
            rep(params["b1t"].shape),
            rep(params["w2"].shape),
            rep(params["b2"].shape),
        ],
        out_specs=pl.BlockSpec((1, tile_b), lambda b: (0, b)),
        compiler_params=pltpu.CompilerParams(
            dimension_semantics=("parallel",),
            # Not a real constraint for this kernel (per-tile use is a few
            # MiB); 32 MiB is safe on every generation incl. v7x (64 MiB).
            vmem_limit_bytes=32 << 20,
        ),
    )(pregates, params["whh_s"], params["w1"], params["b1t"],
      params["w2"], params["b2"])

    return out_row[0, :B].reshape(B, 1)


def _reference_forward(x, w_ih, w_hh, b_ih, b_hh, w1, b1, w2, b2):
    """Pure-JAX f32 reference matching PyTorch nn.LSTM + regressor (eval mode)."""
    B, T, D = x.shape
    H = w_hh.shape[1]
    h = jnp.zeros((B, H), jnp.float32)
    c = jnp.zeros((B, H), jnp.float32)
    for t in range(T):
        gates = x[:, t, :] @ w_ih.T + b_ih + h @ w_hh.T + b_hh
        i = jax.nn.sigmoid(gates[:, 0 * H:1 * H])
        f = jax.nn.sigmoid(gates[:, 1 * H:2 * H])
        g = jnp.tanh(gates[:, 2 * H:3 * H])
        o = jax.nn.sigmoid(gates[:, 3 * H:4 * H])
        c = f * c + i * g
        h = o * jnp.tanh(c)
    z = jnp.maximum(h @ w1.T + b1, 0.0)
    return z @ w2.T + b2


if __name__ == "__main__":
    # Small, module-consistent shapes: batch=2, seq=8, input_dim=16, hidden=32.
    B, T, D, H = 2, 8, 16, 32

    key = jax.random.PRNGKey(0)
    ks = jax.random.split(key, 9)
    scale = float(H) ** -0.5

    # Deterministic parameter init (PyTorch LSTM/Linear-style uniform).
    w_ih = jax.random.uniform(ks[0], (4 * H, D), jnp.float32, -scale, scale)
    w_hh = jax.random.uniform(ks[1], (4 * H, H), jnp.float32, -scale, scale)
    b_ih = jax.random.uniform(ks[2], (4 * H,), jnp.float32, -scale, scale)
    b_hh = jax.random.uniform(ks[3], (4 * H,), jnp.float32, -scale, scale)
    w1 = jax.random.uniform(ks[4], (64, H), jnp.float32, -scale, scale)
    b1 = jax.random.uniform(ks[5], (64,), jnp.float32, -scale, scale)
    w2 = jax.random.uniform(ks[6], (1, 64), jnp.float32, -0.125, 0.125)
    b2 = jax.random.uniform(ks[7], (1,), jnp.float32, -0.125, 0.125)

    x = jax.random.normal(ks[8], (B, T, D), jnp.float32)

    # One-time weight prep (outside the jitted forward).
    params = prepare_params(w_ih, w_hh, b_ih, b_hh, w1, b1, w2, b2)

    y = lstm_ic50_forward(x, params)
    y = jax.block_until_ready(y)

    y_ref = _reference_forward(x, w_ih, w_hh, b_ih, b_hh, w1, b1, w2, b2)
    assert y.shape == (B, 1)
    # All-f32 path (tanh-only gate identity is exact); tight tolerance.
    assert jnp.allclose(y, y_ref, rtol=1e-2, atol=1e-2), (y, y_ref)

    print("KERNEL_OK")
</pallas_src>

<mosaic_0001>
module attributes {stable_mosaic.version = 11 : i64} {
  func.func @_lstm_ic50_kernel(%arg0: i32, %arg1: memref<8x8x128xf32, #tpu.memory_space<vmem>>, %arg2: memref<32x128xf32, #tpu.memory_space<vmem>>, %arg3: memref<64x32xf32, #tpu.memory_space<vmem>>, %arg4: memref<64x1xf32, #tpu.memory_space<vmem>>, %arg5: memref<1x64xf32, #tpu.memory_space<vmem>>, %arg6: memref<1x1xf32, #tpu.memory_space<vmem>>, %arg7: memref<1x8xf32, #tpu.memory_space<vmem>>) attributes {dimension_semantics = [#tpu.dimension_semantics<parallel>], iteration_bounds = array<i64: 1>, scalar_prefetch = 0 : i64, scratch_operands = 0 : i64, tpu.core_type = #tpu.core_type<tc>, window_params = [{transform_indices = @transform_0, window_bounds = array<i64: 8, 8, 128>}, {pipeline_mode = #tpu.pipeline_mode<synchronous>, transform_indices = @transform_1, window_bounds = array<i64: 32, 128>}, {pipeline_mode = #tpu.pipeline_mode<synchronous>, transform_indices = @transform_2, window_bounds = array<i64: 64, 32>}, {pipeline_mode = #tpu.pipeline_mode<synchronous>, transform_indices = @transform_3, window_bounds = array<i64: 64, 1>}, {pipeline_mode = #tpu.pipeline_mode<synchronous>, transform_indices = @transform_4, window_bounds = array<i64: 1, 64>}, {pipeline_mode = #tpu.pipeline_mode<synchronous>, transform_indices = @transform_5, window_bounds = array<i64: 1, 1>}, {transform_indices = @transform_6, window_bounds = array<i64: 1, 8>}]} {
    %c0 = arith.constant 0 : index
    %c0_0 = arith.constant 0 : index
    %0 = vector.load %arg2[%c0, %c0_0] : memref<32x128xf32, #tpu.memory_space<vmem>>, vector<32x128xf32>
    %cst = arith.constant 0.000000e+00 : f32
    %1 = vector.broadcast %cst : f32 to vector<8x32xf32>
    %cst_1 = arith.constant 0.000000e+00 : f32
    %2 = vector.broadcast %cst_1 : f32 to vector<8x32xf32>
    %c0_2 = arith.constant 0 : index
    %c0_3 = arith.constant 0 : index
    %c0_4 = arith.constant 0 : index
    %3 = vector.load %arg1[%c0_2, %c0_3, %c0_4] : memref<8x8x128xf32, #tpu.memory_space<vmem>>, vector<1x8x128xf32>
    %4 = vector.shape_cast %3 : vector<1x8x128xf32> to vector<8x128xf32>
    %cst_5 = arith.constant dense<0.000000e+00> : vector<8x128xf32>
    %5 = tpu.matmul %1, %0, %cst_5 {dimension_numbers = #tpu.dot_dimension_numbers<[1], [0], [0], [1], [0, 0, 1, 1], [], []>} : vector<8x32xf32>, vector<32x128xf32>, vector<8x128xf32> -> vector<8x128xf32>
    %6 = arith.addf %4, %5 : vector<8x128xf32>
    %7 = math.tanh %6 : vector<8x128xf32>
    %cst_6 = arith.constant 5.000000e-01 : f32
    %8 = vector.broadcast %cst_6 : f32 to vector<8x128xf32>
    %9 = arith.mulf %8, %7 : vector<8x128xf32>
    %cst_7 = arith.constant 5.000000e-01 : f32
    %10 = vector.broadcast %cst_7 : f32 to vector<8x128xf32>
    %11 = arith.addf %9, %10 : vector<8x128xf32>
    %12 = vector.extract_strided_slice %11 {offsets = [0, 0], sizes = [8, 32], strides = [1, 1]} : vector<8x128xf32> to vector<8x32xf32>
    %13 = vector.extract_strided_slice %11 {offsets = [0, 32], sizes = [8, 32], strides = [1, 1]} : vector<8x128xf32> to vector<8x32xf32>
    %14 = vector.extract_strided_slice %7 {offsets = [0, 64], sizes = [8, 32], strides = [1, 1]} : vector<8x128xf32> to vector<8x32xf32>
    %15 = vector.extract_strided_slice %11 {offsets = [0, 96], sizes = [8, 32], strides = [1, 1]} : vector<8x128xf32> to vector<8x32xf32>
    %16 = arith.mulf %13, %2 : vector<8x32xf32>
    %17 = arith.mulf %12, %14 : vector<8x32xf32>
    %18 = arith.addf %16, %17 : vector<8x32xf32>
    %19 = math.tanh %18 : vector<8x32xf32>
    %20 = arith.mulf %15, %19 : vector<8x32xf32>
    %c1 = arith.constant 1 : index
    %c0_8 = arith.constant 0 : index
    %c0_9 = arith.constant 0 : index
    %21 = vector.load %arg1[%c1, %c0_8, %c0_9] : memref<8x8x128xf32, #tpu.memory_space<vmem>>, vector<1x8x128xf32>
    %22 = vector.shape_cast %21 : vector<1x8x128xf32> to vector<8x128xf32>
    %cst_10 = arith.constant dense<0.000000e+00> : vector<8x128xf32>
    %23 = tpu.matmul %20, %0, %cst_10 {dimension_numbers = #tpu.dot_dimension_numbers<[1], [0], [0], [1], [0, 0, 1, 1], [], []>} : vector<8x32xf32>, vector<32x128xf32>, vector<8x128xf32> -> vector<8x128xf32>
    %24 = arith.addf %22, %23 : vector<8x128xf32>
    %25 = math.tanh %24 : vector<8x128xf32>
    %cst_11 = arith.constant 5.000000e-01 : f32
    %26 = vector.broadcast %cst_11 : f32 to vector<8x128xf32>
    %27 = arith.mulf %26, %25 : vector<8x128xf32>
    %cst_12 = arith.constant 5.000000e-01 : f32
    %28 = vector.broadcast %cst_12 : f32 to vector<8x128xf32>
    %29 = arith.addf %27, %28 : vector<8x128xf32>
    %30 = vector.extract_strided_slice %29 {offsets = [0, 0], sizes = [8, 32], strides = [1, 1]} : vector<8x128xf32> to vector<8x32xf32>
    %31 = vector.extract_strided_slice %29 {offsets = [0, 32], sizes = [8, 32], strides = [1, 1]} : vector<8x128xf32> to vector<8x32xf32>
    %32 = vector.extract_strided_slice %25 {offsets = [0, 64], sizes = [8, 32], strides = [1, 1]} : vector<8x128xf32> to vector<8x32xf32>
    %33 = vector.extract_strided_slice %29 {offsets = [0, 96], sizes = [8, 32], strides = [1, 1]} : vector<8x128xf32> to vector<8x32xf32>
    %34 = arith.mulf %31, %18 : vector<8x32xf32>
    %35 = arith.mulf %30, %32 : vector<8x32xf32>
    %36 = arith.addf %34, %35 : vector<8x32xf32>
    %37 = math.tanh %36 : vector<8x32xf32>
    %38 = arith.mulf %33, %37 : vector<8x32xf32>
    %c2 = arith.constant 2 : index
    %c0_13 = arith.constant 0 : index
    %c0_14 = arith.constant 0 : index
    %39 = vector.load %arg1[%c2, %c0_13, %c0_14] : memref<8x8x128xf32, #tpu.memory_space<vmem>>, vector<1x8x128xf32>
    %40 = vector.shape_cast %39 : vector<1x8x128xf32> to vector<8x128xf32>
    %cst_15 = arith.constant dense<0.000000e+00> : vector<8x128xf32>
    %41 = tpu.matmul %38, %0, %cst_15 {dimension_numbers = #tpu.dot_dimension_numbers<[1], [0], [0], [1], [0, 0, 1, 1], [], []>} : vector<8x32xf32>, vector<32x128xf32>, vector<8x128xf32> -> vector<8x128xf32>
    %42 = arith.addf %40, %41 : vector<8x128xf32>
    %43 = math.tanh %42 : vector<8x128xf32>
    %cst_16 = arith.constant 5.000000e-01 : f32
    %44 = vector.broadcast %cst_16 : f32 to vector<8x128xf32>
    %45 = arith.mulf %44, %43 : vector<8x128xf32>
    %cst_17 = arith.constant 5.000000e-01 : f32
    %46 = vector.broadcast %cst_17 : f32 to vector<8x128xf32>
    %47 = arith.addf %45, %46 : vector<8x128xf32>
    %48 = vector.extract_strided_slice %47 {offsets = [0, 0], sizes = [8, 32], strides = [1, 1]} : vector<8x128xf32> to vector<8x32xf32>
    %49 = vector.extract_strided_slice %47 {offsets = [0, 32], sizes = [8, 32], strides = [1, 1]} : vector<8x128xf32> to vector<8x32xf32>
    %50 = vector.extract_strided_slice %43 {offsets = [0, 64], sizes = [8, 32], strides = [1, 1]} : vector<8x128xf32> to vector<8x32xf32>
    %51 = vector.extract_strided_slice %47 {offsets = [0, 96], sizes = [8, 32], strides = [1, 1]} : vector<8x128xf32> to vector<8x32xf32>
    %52 = arith.mulf %49, %36 : vector<8x32xf32>
    %53 = arith.mulf %48, %50 : vector<8x32xf32>
    %54 = arith.addf %52, %53 : vector<8x32xf32>
    %55 = math.tanh %54 : vector<8x32xf32>
    %56 = arith.mulf %51, %55 : vector<8x32xf32>
    %c3 = arith.constant 3 : index
    %c0_18 = arith.constant 0 : index
    %c0_19 = arith.constant 0 : index
    %57 = vector.load %arg1[%c3, %c0_18, %c0_19] : memref<8x8x128xf32, #tpu.memory_space<vmem>>, vector<1x8x128xf32>
    %58 = vector.shape_cast %57 : vector<1x8x128xf32> to vector<8x128xf32>
    %cst_20 = arith.constant dense<0.000000e+00> : vector<8x128xf32>
    %59 = tpu.matmul %56, %0, %cst_20 {dimension_numbers = #tpu.dot_dimension_numbers<[1], [0], [0], [1], [0, 0, 1, 1], [], []>} : vector<8x32xf32>, vector<32x128xf32>, vector<8x128xf32> -> vector<8x128xf32>
    %60 = arith.addf %58, %59 : vector<8x128xf32>
    %61 = math.tanh %60 : vector<8x128xf32>
    %cst_21 = arith.constant 5.000000e-01 : f32
    %62 = vector.broadcast %cst_21 : f32 to vector<8x128xf32>
    %63 = arith.mulf %62, %61 : vector<8x128xf32>
    %cst_22 = arith.constant 5.000000e-01 : f32
    %64 = vector.broadcast %cst_22 : f32 to vector<8x128xf32>
    %65 = arith.addf %63, %64 : vector<8x128xf32>
    %66 = vector.extract_strided_slice %65 {offsets = [0, 0], sizes = [8, 32], strides = [1, 1]} : vector<8x128xf32> to vector<8x32xf32>
    %67 = vector.extract_strided_slice %65 {offsets = [0, 32], sizes = [8, 32], strides = [1, 1]} : vector<8x128xf32> to vector<8x32xf32>
    %68 = vector.extract_strided_slice %61 {offsets = [0, 64], sizes = [8, 32], strides = [1, 1]} : vector<8x128xf32> to vector<8x32xf32>
    %69 = vector.extract_strided_slice %65 {offsets = [0, 96], sizes = [8, 32], strides = [1, 1]} : vector<8x128xf32> to vector<8x32xf32>
    %70 = arith.mulf %67, %54 : vector<8x32xf32>
    %71 = arith.mulf %66, %68 : vector<8x32xf32>
    %72 = arith.addf %70, %71 : vector<8x32xf32>
    %73 = math.tanh %72 : vector<8x32xf32>
    %74 = arith.mulf %69, %73 : vector<8x32xf32>
    %c4 = arith.constant 4 : index
    %c0_23 = arith.constant 0 : index
    %c0_24 = arith.constant 0 : index
    %75 = vector.load %arg1[%c4, %c0_23, %c0_24] : memref<8x8x128xf32, #tpu.memory_space<vmem>>, vector<1x8x128xf32>
    %76 = vector.shape_cast %75 : vector<1x8x128xf32> to vector<8x128xf32>
    %cst_25 = arith.constant dense<0.000000e+00> : vector<8x128xf32>
    %77 = tpu.matmul %74, %0, %cst_25 {dimension_numbers = #tpu.dot_dimension_numbers<[1], [0], [0], [1], [0, 0, 1, 1], [], []>} : vector<8x32xf32>, vector<32x128xf32>, vector<8x128xf32> -> vector<8x128xf32>
    %78 = arith.addf %76, %77 : vector<8x128xf32>
    %79 = math.tanh %78 : vector<8x128xf32>
    %cst_26 = arith.constant 5.000000e-01 : f32
    %80 = vector.broadcast %cst_26 : f32 to vector<8x128xf32>
    %81 = arith.mulf %80, %79 : vector<8x128xf32>
    %cst_27 = arith.constant 5.000000e-01 : f32
    %82 = vector.broadcast %cst_27 : f32 to vector<8x128xf32>
    %83 = arith.addf %81, %82 : vector<8x128xf32>
    %84 = vector.extract_strided_slice %83 {offsets = [0, 0], sizes = [8, 32], strides = [1, 1]} : vector<8x128xf32> to vector<8x32xf32>
    %85 = vector.extract_strided_slice %83 {offsets = [0, 32], sizes = [8, 32], strides = [1, 1]} : vector<8x128xf32> to vector<8x32xf32>
    %86 = vector.extract_strided_slice %79 {offsets = [0, 64], sizes = [8, 32], strides = [1, 1]} : vector<8x128xf32> to vector<8x32xf32>
    %87 = vector.extract_strided_slice %83 {offsets = [0, 96], sizes = [8, 32], strides = [1, 1]} : vector<8x128xf32> to vector<8x32xf32>
    %88 = arith.mulf %85, %72 : vector<8x32xf32>
    %89 = arith.mulf %84, %86 : vector<8x32xf32>
    %90 = arith.addf %88, %89 : vector<8x32xf32>
    %91 = math.tanh %90 : vector<8x32xf32>
    %92 = arith.mulf %87, %91 : vector<8x32xf32>
    %c5 = arith.constant 5 : index
    %c0_28 = arith.constant 0 : index
    %c0_29 = arith.constant 0 : index
    %93 = vector.load %arg1[%c5, %c0_28, %c0_29] : memref<8x8x128xf32, #tpu.memory_space<vmem>>, vector<1x8x128xf32>
    %94 = vector.shape_cast %93 : vector<1x8x128xf32> to vector<8x128xf32>
    %cst_30 = arith.constant dense<0.000000e+00> : vector<8x128xf32>
    %95 = tpu.matmul %92, %0, %cst_30 {dimension_numbers = #tpu.dot_dimension_numbers<[1], [0], [0], [1], [0, 0, 1, 1], [], []>} : vector<8x32xf32>, vector<32x128xf32>, vector<8x128xf32> -> vector<8x128xf32>
    %96 = arith.addf %94, %95 : vector<8x128xf32>
    %97 = math.tanh %96 : vector<8x128xf32>
    %cst_31 = arith.constant 5.000000e-01 : f32
    %98 = vector.broadcast %cst_31 : f32 to vector<8x128xf32>
    %99 = arith.mulf %98, %97 : vector<8x128xf32>
    %cst_32 = arith.constant 5.000000e-01 : f32
    %100 = vector.broadcast %cst_32 : f32 to vector<8x128xf32>
    %101 = arith.addf %99, %100 : vector<8x128xf32>
    %102 = vector.extract_strided_slice %101 {offsets = [0, 0], sizes = [8, 32], strides = [1, 1]} : vector<8x128xf32> to vector<8x32xf32>
    %103 = vector.extract_strided_slice %101 {offsets = [0, 32], sizes = [8, 32], strides = [1, 1]} : vector<8x128xf32> to vector<8x32xf32>
    %104 = vector.extract_strided_slice %97 {offsets = [0, 64], sizes = [8, 32], strides = [1, 1]} : vector<8x128xf32> to vector<8x32xf32>
    %105 = vector.extract_strided_slice %101 {offsets = [0, 96], sizes = [8, 32], strides = [1, 1]} : vector<8x128xf32> to vector<8x32xf32>
    %106 = arith.mulf %103, %90 : vector<8x32xf32>
    %107 = arith.mulf %102, %104 : vector<8x32xf32>
    %108 = arith.addf %106, %107 : vector<8x32xf32>
    %109 = math.tanh %108 : vector<8x32xf32>
    %110 = arith.mulf %105, %109 : vector<8x32xf32>
    %c6 = arith.constant 6 : index
    %c0_33 = arith.constant 0 : index
    %c0_34 = arith.constant 0 : index
    %111 = vector.load %arg1[%c6, %c0_33, %c0_34] : memref<8x8x128xf32, #tpu.memory_space<vmem>>, vector<1x8x128xf32>
    %112 = vector.shape_cast %111 : vector<1x8x128xf32> to vector<8x128xf32>
    %cst_35 = arith.constant dense<0.000000e+00> : vector<8x128xf32>
    %113 = tpu.matmul %110, %0, %cst_35 {dimension_numbers = #tpu.dot_dimension_numbers<[1], [0], [0], [1], [0, 0, 1, 1], [], []>} : vector<8x32xf32>, vector<32x128xf32>, vector<8x128xf32> -> vector<8x128xf32>
    %114 = arith.addf %112, %113 : vector<8x128xf32>
    %115 = math.tanh %114 : vector<8x128xf32>
    %cst_36 = arith.constant 5.000000e-01 : f32
    %116 = vector.broadcast %cst_36 : f32 to vector<8x128xf32>
    %117 = arith.mulf %116, %115 : vector<8x128xf32>
    %cst_37 = arith.constant 5.000000e-01 : f32
    %118 = vector.broadcast %cst_37 : f32 to vector<8x128xf32>
    %119 = arith.addf %117, %118 : vector<8x128xf32>
    %120 = vector.extract_strided_slice %119 {offsets = [0, 0], sizes = [8, 32], strides = [1, 1]} : vector<8x128xf32> to vector<8x32xf32>
    %121 = vector.extract_strided_slice %119 {offsets = [0, 32], sizes = [8, 32], strides = [1, 1]} : vector<8x128xf32> to vector<8x32xf32>
    %122 = vector.extract_strided_slice %115 {offsets = [0, 64], sizes = [8, 32], strides = [1, 1]} : vector<8x128xf32> to vector<8x32xf32>
    %123 = vector.extract_strided_slice %119 {offsets = [0, 96], sizes = [8, 32], strides = [1, 1]} : vector<8x128xf32> to vector<8x32xf32>
    %124 = arith.mulf %121, %108 : vector<8x32xf32>
    %125 = arith.mulf %120, %122 : vector<8x32xf32>
    %126 = arith.addf %124, %125 : vector<8x32xf32>
    %127 = math.tanh %126 : vector<8x32xf32>
    %128 = arith.mulf %123, %127 : vector<8x32xf32>
    %c7 = arith.constant 7 : index
    %c0_38 = arith.constant 0 : index
    %c0_39 = arith.constant 0 : index
    %129 = vector.load %arg1[%c7, %c0_38, %c0_39] : memref<8x8x128xf32, #tpu.memory_space<vmem>>, vector<1x8x128xf32>
    %130 = vector.shape_cast %129 : vector<1x8x128xf32> to vector<8x128xf32>
    %cst_40 = arith.constant dense<0.000000e+00> : vector<8x128xf32>
    %131 = tpu.matmul %128, %0, %cst_40 {dimension_numbers = #tpu.dot_dimension_numbers<[1], [0], [0], [1], [0, 0, 1, 1], [], []>} : vector<8x32xf32>, vector<32x128xf32>, vector<8x128xf32> -> vector<8x128xf32>
    %132 = arith.addf %130, %131 : vector<8x128xf32>
    %133 = math.tanh %132 : vector<8x128xf32>
    %cst_41 = arith.constant 5.000000e-01 : f32
    %134 = vector.broadcast %cst_41 : f32 to vector<8x128xf32>
    %135 = arith.mulf %134, %133 : vector<8x128xf32>
    %cst_42 = arith.constant 5.000000e-01 : f32
    %136 = vector.broadcast %cst_42 : f32 to vector<8x128xf32>
    %137 = arith.addf %135, %136 : vector<8x128xf32>
    %138 = vector.extract_strided_slice %137 {offsets = [0, 0], sizes = [8, 32], strides = [1, 1]} : vector<8x128xf32> to vector<8x32xf32>
    %139 = vector.extract_strided_slice %137 {offsets = [0, 32], sizes = [8, 32], strides = [1, 1]} : vector<8x128xf32> to vector<8x32xf32>
    %140 = vector.extract_strided_slice %133 {offsets = [0, 64], sizes = [8, 32], strides = [1, 1]} : vector<8x128xf32> to vector<8x32xf32>
    %141 = vector.extract_strided_slice %137 {offsets = [0, 96], sizes = [8, 32], strides = [1, 1]} : vector<8x128xf32> to vector<8x32xf32>
    %142 = arith.mulf %139, %126 : vector<8x32xf32>
    %143 = arith.mulf %138, %140 : vector<8x32xf32>
    %144 = arith.addf %142, %143 : vector<8x32xf32>
    %145 = math.tanh %144 : vector<8x32xf32>
    %146 = arith.mulf %141, %145 : vector<8x32xf32>
    %c0_43 = arith.constant 0 : index
    %c0_44 = arith.constant 0 : index
    %147 = vector.load %arg3[%c0_43, %c0_44] : memref<64x32xf32, #tpu.memory_space<vmem>>, vector<64x32xf32>
    %cst_45 = arith.constant dense<0.000000e+00> : vector<64x8xf32>
    %148 = tpu.matmul %147, %146, %cst_45 {dimension_numbers = #tpu.dot_dimension_numbers<[1], [1], [0], [0], [0, 0, 1, 0], [], []>} : vector<64x32xf32>, vector<8x32xf32>, vector<64x8xf32> -> vector<64x8xf32>
    %c0_46 = arith.constant 0 : index
    %c0_47 = arith.constant 0 : index
    %149 = vector.load %arg4[%c0_46, %c0_47] : memref<64x1xf32, #tpu.memory_space<vmem>>, vector<64x1xf32>
    %150 = vector.broadcast %149 : vector<64x1xf32> to vector<64x8xf32>
    %151 = arith.addf %148, %150 : vector<64x8xf32>
    %cst_48 = arith.constant 0.000000e+00 : f32
    %152 = vector.broadcast %cst_48 : f32 to vector<64x8xf32>
    %153 = arith.maximumf %151, %152 : vector<64x8xf32>
    %c0_49 = arith.constant 0 : index
    %c0_50 = arith.constant 0 : index
    %154 = vector.load %arg5[%c0_49, %c0_50] : memref<1x64xf32, #tpu.memory_space<vmem>>, vector<1x64xf32>
    %cst_51 = arith.constant dense<0.000000e+00> : vector<1x8xf32>
    %155 = tpu.matmul %154, %153, %cst_51 {dimension_numbers = #tpu.dot_dimension_numbers<[1], [0], [0], [1], [0, 0, 1, 1], [], []>} : vector<1x64xf32>, vector<64x8xf32>, vector<1x8xf32> -> vector<1x8xf32>
    %c0_52 = arith.constant 0 : index
    %c0_53 = arith.constant 0 : index
    %156 = vector.load %arg6[%c0_52, %c0_53] : memref<1x1xf32, #tpu.memory_space<vmem>>, vector<1x1xf32>
    %157 = vector.broadcast %156 : vector<1x1xf32> to vector<1x8xf32>
    %158 = arith.addf %155, %157 : vector<1x8xf32>
    %c0_54 = arith.constant 0 : index
    %c0_55 = arith.constant 0 : index
    %159 = vector.load %arg7[%c0_54, %c0_55] : memref<1x8xf32, #tpu.memory_space<vmem>>, vector<1x8xf32>
    tpu.vector_store %arg7[%c0_54, %c0_55], %158 {strides = array<i32>} : memref<1x8xf32, #tpu.memory_space<vmem>>, vector<1x8xf32>,
    return
  }
  func.func @transform_0(%arg0: i32) -> (i32, i32, i32) {
    %c0_i32 = arith.constant 0 : i32
    %c0_i32_0 = arith.constant 0 : i32
    %c0_i32_1 = arith.constant 0 : i32
    return %c0_i32, %arg0, %c0_i32_0 : i32, i32, i32
  }
  func.func @transform_1(%arg0: i32) -> (i32, i32) {
    %c0_i32 = arith.constant 0 : i32
    %c0_i32_0 = arith.constant 0 : i32
    %c0_i32_1 = arith.constant 0 : i32
    return %c0_i32, %c0_i32_0 : i32, i32
  }
  func.func @transform_2(%arg0: i32) -> (i32, i32) {
    %c0_i32 = arith.constant 0 : i32
    %c0_i32_0 = arith.constant 0 : i32
    %c0_i32_1 = arith.constant 0 : i32
    return %c0_i32, %c0_i32_0 : i32, i32
  }
  func.func @transform_3(%arg0: i32) -> (i32, i32) {
    %c0_i32 = arith.constant 0 : i32
    %c0_i32_0 = arith.constant 0 : i32
    %c0_i32_1 = arith.constant 0 : i32
    return %c0_i32, %c0_i32_0 : i32, i32
  }
  func.func @transform_4(%arg0: i32) -> (i32, i32) {
    %c0_i32 = arith.constant 0 : i32
    %c0_i32_0 = arith.constant 0 : i32
    %c0_i32_1 = arith.constant 0 : i32
    return %c0_i32, %c0_i32_0 : i32, i32
  }
  func.func @transform_5(%arg0: i32) -> (i32, i32) {
    %c0_i32 = arith.constant 0 : i32
    %c0_i32_0 = arith.constant 0 : i32
    %c0_i32_1 = arith.constant 0 : i32
    return %c0_i32, %c0_i32_0 : i32, i32
  }
  func.func @transform_6(%arg0: i32) -> (i32, i32) {
    %c0_i32 = arith.constant 0 : i32
    %c0_i32_0 = arith.constant 0 : i32
    return %c0_i32, %arg0 : i32, i32
  }
}

</mosaic_0001>

<bundles_post_ra>
// kernel: lstm_ic50_forward.1
= control target key start
LH: loop header
LB: loop body
LE: loop exit
PB: predicated region body
PF: predicated region fallthrough
CT: control target
= control target key end

     0   :  { %v1403_v0 = vmov 0.0|0.0   ;;  %vm1404_vm0 = vmmov 0   ;;  %v1405_v4 = vmov 0.0   ;;  %s1406_s30 = smov 64   ;;  %s1407_s7 = smov 32   ;;  %vm30_vm1 = vcmask 261120   ;;  %s1645_s1 = inlined_call_operand.vmem [shape: f32[32,128], index: 1, kind: input, shape index: {}]   ;;  %s1646_s0 = inlined_call_operand.vmem [shape: f32[8,8,128], index: 0, kind: input, shape index: {}]   ;;  %s1647_s2 = inlined_call_operand.vmem [shape: f32[64,32], index: 2, kind: input, shape index: {}]   ;;  %s1648_s3 = inlined_call_operand.vmem [shape: f32[64,1], index: 3, kind: input, shape index: {}]   ;;  %s1649_s5 = inlined_call_operand.<no memory space> [shape: f32[1,1], index: 5, kind: input, shape index: {}]   ;;  %s1650_s4 = inlined_call_operand.vmem [shape: f32[1,64], index: 4, kind: input, shape index: {}]   ;;  %s1651_s6 = inlined_call_operand.vmem [shape: f32[1,8], index: 6, kind: output, shape index: {}]  }
   0x1   :  { %1303 = vmatprep.subr.bf16.mxu0 %v1403_v0  ;;  %v25_v1 = vld [vmem:[%s1645_s1] sm:$0xff]  ;;  %v26_v2 = vld [vmem:[%s1645_s1 + $0x8] sm:$0xff]  ;;  %v27_v3 = vld [vmem:[%s1645_s1 + $0x10] sm:$0xff]  ;;  %1190 = vmatprep.mubr.msk.f32.mxu0 %vm1404_vm0, %v1405_v4  ;;  %vm1020_vm2 = vcmask 523264   ;;  %vm1094_vm3 = vcmask 57344  }
   0x2   :  { %v1456_v5 = vpack.c.bf16 %v26_v2, %v25_v1  ;;  %v28_v6 = vld [vmem:[%s1645_s1 + $0x18] sm:$0xff]  ;;  %1309 = vmatprep.subr.bf16.mxu1 %v1403_v0  ;;  %1201 = vmatprep.mubr.msk.f32.mxu1 %vm1404_vm0, %v1405_v4  ;;  %v29_v8 = vld [vmem:[%s1646_s0] sm:$0xff]  ;;  %v1100_v24 = vld [vmem:[%s1646_s0 + $0x8] sm:$0xff] }
   0x3   :  { %v1465_v7 = vpack.c.bf16 %v28_v6, %v27_v3  ;;  %v1102_v40 = vld [vmem:[%s1646_s0 + $0x10] sm:$0xff]  ;;  %v1104_v56 = vld [vmem:[%s1646_s0 + $0x18] sm:$0xff] }
   0x4   :  { %1305 = vmatpush3.bf16.msra.mxu0 %v1456_v5  ;;  %1311 = vmatpush3.bf16.msra.mxu1 %v1456_v5 }
   0x5   :  { %1306 = vmatprep.subr.bf16.mxu0 %v1403_v0  ;;  %1312 = vmatprep.subr.bf16.mxu1 %v1403_v0 }
   0x8   :  { %1308 = vmatpush3.bf16.msra.mxu0 %v1465_v7  ;;  %1314 = vmatpush3.bf16.msra.mxu1 %v1465_v7 }
   0x9   :  { %1315 = vmatprep.subr.bf16.mxu0 %v1403_v0  ;;  %1321 = vmatprep.subr.bf16.mxu1 %v1403_v0 }
   0xb   :  { %1191 = vmatmul.mubr.f32.vlgmr.msra.gmra.mrb[0].mxu0 %v1405_v4 }
   0xc   :  { %1317 = vmatpush3.bf16.msra.mxu0 %v1456_v5  ;;  %1212 = vmatprep.mubr.msk.f32.mxu0 %vm1404_vm0, %v1405_v4 }
   0xd   :  { %1318 = vmatprep.subr.bf16.mxu0 %v1403_v0 }
  0x10   :  { %1320 = vmatpush3.bf16.msra.mxu0 %v1465_v7 }
  0x11   :  { %1327 = vmatprep.subr.bf16.mxu0 %v1403_v0 }
  0xde   :  { %v100_v9 = vpop.f32.mrb[0].mxu0 }
  0xdf   :  { %v104_v10 = vadd.f32 %v100_v9, %v29_v8  ;;  %v1192_v11 = vpop.f32.mrb[1].mxu0 }
  0xe1   :  { %1371 = vtanh.f32 %v104_v10 }
  0xeb   :  { %v1372_v12 = vpop.eup %1371 }
  0xec   :  { %110 = vrot.lane.b32.xlu0 %v1372_v12, %s1406_s30  ;;  %v106_v13 = vmul.f32 0.5, %v1372_v12  ;;  %v1106_v12 = vld [vmem:[%s1646_s0 + $0x20] sm:$0xff] }
  0xee   :  { %v107_v14 = vadd.f32 0.5, %v106_v13 }
  0xf0   :  { %v108_v17 = vmul.f32 0.0, %v107_v14 }
 0x15e   :  { %v111_v15 = vpop.permute.xlu0 %110 }
 0x15f   :  { %v113_v16 = vmul.f32 %v111_v15, %v107_v14 }
 0x161   :  { %115 = vrot.lane.b32.xlu0 %v113_v16, %s1407_s7 }
 0x1d3   :  { %v116_v18 = vpop.permute.xlu0 %115 }
 0x1d4   :  { %v118_v19 = vadd.f32 %v116_v18, %v108_v17 }
 0x1d6   :  { %1373 = vtanh.f32 %v118_v19 }
 0x1e0   :  { %v1374_v20 = vpop.eup %1373 }
 0x1e1   :  { %121 = vrot.lane.b32.xlu1 %v1374_v20, %s1406_s30 }
 0x253   :  { %v122_v21 = vpop.permute.xlu1 %121 }
 0x254   :  { %v124_v22 = vmul.f32 %v122_v21, %v107_v14 }
 0x256   :  { %128 = vrot.lane.b32.xlu1 %v124_v22, %s1407_s7 }
 0x2c8   :  { %v129_v23 = vpop.permute.xlu1 %128 }
 0x2c9   :  { %1202 = vmatmul.mubr.msk.f32.vlgmr.msra.gmra.mrb[0].mxu1 %vm30_vm1, %v129_v23 }
 0x2ca   :  { %1323 = vmatpush3.bf16.msra.mxu1 %v1456_v5  ;;  %1223 = vmatprep.mubr.msk.f32.mxu1 %vm1404_vm0, %v1405_v4 }
 0x2cb   :  { %1324 = vmatprep.subr.bf16.mxu1 %v1403_v0 }
 0x2ce   :  { %1326 = vmatpush3.bf16.msra.mxu1 %v1465_v7 }
 0x2cf   :  { %1333 = vmatprep.subr.bf16.mxu1 %v1403_v0 }
 0x39c   :  { %v198_v25 = vpop.f32.mrb[0].mxu1 }
 0x39d   :  { %v202_v26 = vadd.f32 %v1100_v24, %v198_v25  ;;  %v1203_v27 = vpop.f32.mrb[1].mxu1 }
 0x39f   :  { %1375 = vtanh.f32 %v202_v26 }
 0x3a9   :  { %v1376_v28 = vpop.eup %1375 }
 0x3aa   :  { %208 = vrot.lane.b32.xlu0 %v1376_v28, %s1406_s30  ;;  %v204_v29 = vmul.f32 0.5, %v1376_v28  ;;  %v1108_v28 = vld [vmem:[%s1646_s0 + $0x28] sm:$0xff] }
 0x3ac   :  { %v205_v30 = vadd.f32 0.5, %v204_v29 }
 0x3ae   :  { %v206_v33 = vmul.f32 %v205_v30, %v118_v19 }
 0x41c   :  { %v209_v31 = vpop.permute.xlu0 %208 }
 0x41d   :  { %v211_v32 = vmul.f32 %v209_v31, %v205_v30 }
 0x41f   :  { %213 = vrot.lane.b32.xlu1 %v211_v32, %s1407_s7 }
 0x491   :  { %v214_v34 = vpop.permute.xlu1 %213 }
 0x492   :  { %v216_v35 = vadd.f32 %v214_v34, %v206_v33 }
 0x494   :  { %1377 = vtanh.f32 %v216_v35 }
 0x49e   :  { %v1378_v36 = vpop.eup %1377 }
 0x49f   :  { %219 = vrot.lane.b32.xlu0 %v1378_v36, %s1406_s30 }
 0x511   :  { %v220_v37 = vpop.permute.xlu0 %219 }
 0x512   :  { %v222_v38 = vmul.f32 %v220_v37, %v205_v30 }
 0x514   :  { %226 = vrot.lane.b32.xlu1 %v222_v38, %s1407_s7 }
 0x586   :  { %v227_v39 = vpop.permute.xlu1 %226 }
 0x587   :  { %1213 = vmatmul.mubr.msk.f32.vlgmr.msra.gmra.mrb[2].mxu0 %vm30_vm1, %v227_v39 }
 0x588   :  { %1329 = vmatpush3.bf16.msra.mxu0 %v1456_v5  ;;  %1234 = vmatprep.mubr.msk.f32.mxu0 %vm1404_vm0, %v1405_v4 }
 0x589   :  { %1330 = vmatprep.subr.bf16.mxu0 %v1403_v0 }
 0x58c   :  { %1332 = vmatpush3.bf16.msra.mxu0 %v1465_v7 }
 0x58d   :  { %1339 = vmatprep.subr.bf16.mxu0 %v1403_v0 }
 0x65a   :  { %v296_v41 = vpop.f32.mrb[2].mxu0 }
 0x65b   :  { %v300_v42 = vadd.f32 %v1102_v40, %v296_v41  ;;  %v1214_v43 = vpop.f32.mrb[3].mxu0 }
 0x65d   :  { %1379 = vtanh.f32 %v300_v42  ;;  %v1110_v42 = vld [vmem:[%s1646_s0 + $0x30] sm:$0xff] }
 0x667   :  { %v1380_v44 = vpop.eup %1379 }
 0x668   :  { %306 = vrot.lane.b32.xlu0 %v1380_v44, %s1406_s30  ;;  %v302_v45 = vmul.f32 0.5, %v1380_v44 }
 0x66a   :  { %v303_v46 = vadd.f32 0.5, %v302_v45 }
 0x66c   :  { %v304_v49 = vmul.f32 %v303_v46, %v216_v35 }
 0x6da   :  { %v307_v47 = vpop.permute.xlu0 %306 }
 0x6db   :  { %v309_v48 = vmul.f32 %v307_v47, %v303_v46 }
 0x6dd   :  { %311 = vrot.lane.b32.xlu1 %v309_v48, %s1407_s7 }
 0x74f   :  { %v312_v50 = vpop.permute.xlu1 %311 }
 0x750   :  { %v314_v51 = vadd.f32 %v312_v50, %v304_v49 }
 0x752   :  { %1381 = vtanh.f32 %v314_v51 }
 0x75c   :  { %v1382_v52 = vpop.eup %1381 }
 0x75d   :  { %317 = vrot.lane.b32.xlu0 %v1382_v52, %s1406_s30 }
 0x7cf   :  { %v318_v53 = vpop.permute.xlu0 %317 }
 0x7d0   :  { %v320_v54 = vmul.f32 %v318_v53, %v303_v46 }
 0x7d2   :  { %324 = vrot.lane.b32.xlu1 %v320_v54, %s1407_s7 }
 0x844   :  { %v325_v55 = vpop.permute.xlu1 %324 }
 0x845   :  { %1224 = vmatmul.mubr.msk.f32.vlgmr.msra.gmra.mrb[2].mxu1 %vm30_vm1, %v325_v55 }
 0x846   :  { %1335 = vmatpush3.bf16.msra.mxu1 %v1456_v5  ;;  %1245 = vmatprep.mubr.msk.f32.mxu1 %vm1404_vm0, %v1405_v4 }
 0x847   :  { %1336 = vmatprep.subr.bf16.mxu1 %v1403_v0 }
 0x84a   :  { %1338 = vmatpush3.bf16.msra.mxu1 %v1465_v7 }
 0x84b   :  { %1345 = vmatprep.subr.bf16.mxu1 %v1403_v0 }
 0x918   :  { %v394_v57 = vpop.f32.mrb[2].mxu1 }
 0x919   :  { %v398_v58 = vadd.f32 %v1104_v56, %v394_v57  ;;  %v1225_v59 = vpop.f32.mrb[3].mxu1 }
 0x91b   :  { %1383 = vtanh.f32 %v398_v58  ;;  %v1112_v58 = vld [vmem:[%s1646_s0 + $0x38] sm:$0xff] }
 0x925   :  { %v1384_v60 = vpop.eup %1383 }
 0x926   :  { %404 = vrot.lane.b32.xlu0 %v1384_v60, %s1406_s30  ;;  %v400_v61 = vmul.f32 0.5, %v1384_v60 }
 0x928   :  { %v401_v62 = vadd.f32 0.5, %v400_v61 }
 0x92a   :  { %v402_v2 = vmul.f32 %v401_v62, %v314_v51 }
 0x998   :  { %v405_v63 = vpop.permute.xlu0 %404 }
 0x999   :  { %v407_v1 = vmul.f32 %v405_v63, %v401_v62 }
 0x99b   :  { %409 = vrot.lane.b32.xlu1 %v407_v1, %s1407_s7 }
 0xa0d   :  { %v410_v3 = vpop.permute.xlu1 %409 }
 0xa0e   :  { %v412_v6 = vadd.f32 %v410_v3, %v402_v2 }
 0xa10   :  { %1385 = vtanh.f32 %v412_v6 }
 0xa1a   :  { %v1386_v8 = vpop.eup %1385 }
 0xa1b   :  { %415 = vrot.lane.b32.xlu0 %v1386_v8, %s1406_s30 }
 0xa8d   :  { %v416_v9 = vpop.permute.xlu0 %415 }
 0xa8e   :  { %v418_v10 = vmul.f32 %v416_v9, %v401_v62 }
 0xa90   :  { %422 = vrot.lane.b32.xlu1 %v418_v10, %s1407_s7  ;;  %v811_v10 = vld [vmem:[%s1647_s2] sm:$0xff] }
 0xb02   :  { %v423_v11 = vpop.permute.xlu1 %422 }
 0xb03   :  { %1235 = vmatmul.mubr.msk.f32.vlgmr.msra.gmra.mrb[4].mxu0 %vm30_vm1, %v423_v11 }
 0xb04   :  { %1341 = vmatpush3.bf16.msra.mxu0 %v1456_v5  ;;  %1256 = vmatprep.mubr.msk.f32.mxu0 %vm1404_vm0, %v1405_v4 }
 0xb05   :  { %1342 = vmatprep.subr.bf16.mxu0 %v1403_v0 }
 0xb08   :  { %1344 = vmatpush3.bf16.msra.mxu0 %v1465_v7 }
 0xbd6   :  { %v492_v13 = vpop.f32.mrb[4].mxu0 }
 0xbd7   :  { %v496_v14 = vadd.f32 %v1106_v12, %v492_v13  ;;  %v1236_v15 = vpop.f32.mrb[5].mxu0  ;;  %v1408_v13 = vmov 0  }
 0xbd8   :  { %1370 = vset.pattern.permute.xlu1 %v1408_v13  ;;  %1369 = vset.pattern.permute.xlu0 %v1408_v13  ;;  %v819_v15 = vld [vmem:[%s1648_s3] sm:$0xff] }
 0xbd9   :  { %1387 = vtanh.f32 %v496_v14  ;;  %v820_v14 = vld [vmem:[%s1648_s3 + $0x8] sm:$0xff] }
 0xbe3   :  { %v1388_v16 = vpop.eup %1387 }
 0xbe4   :  { %502 = vrot.lane.b32.xlu0 %v1388_v16, %s1406_s30  ;;  %v498_v17 = vmul.f32 0.5, %v1388_v16  ;;  %v11_v16 = vstv %s1649_s5 }
 0xbe5   :  { %12 = vst [vmem:[#allocation2] sm:$0x1] %v11_v16 }
 0xbe6   :  { %v499_v18 = vadd.f32 0.5, %v498_v17  ;;  %v821_v17 = vld [vmem:[%s1648_s3 + $0x10] sm:$0xff] }
 0xbe8   :  { %v500_v21 = vmul.f32 %v499_v18, %v412_v6 }
 0xc56   :  { %v503_v19 = vpop.permute.xlu0 %502 }
 0xc57   :  { %v505_v20 = vmul.f32 %v503_v19, %v499_v18  ;;  %v823_v19 = vld [vmem:[%s1648_s3 + $0x20] sm:$0xff] }
 0xc59   :  { %507 = vrot.lane.b32.xlu1 %v505_v20, %s1407_s7  ;;  %v824_v20 = vld [vmem:[%s1648_s3 + $0x28] sm:$0xff] }
 0xccb   :  { %v508_v22 = vpop.permute.xlu1 %507 }
 0xccc   :  { %v510_v23 = vadd.f32 %v508_v22, %v500_v21  ;;  %v825_v21 = vld [vmem:[%s1648_s3 + $0x30] sm:$0xff]  ;;  %v826_v22 = vld [vmem:[%s1648_s3 + $0x38] sm:$0xff] }
 0xcce   :  { %1389 = vtanh.f32 %v510_v23 }
 0xcd8   :  { %v1390_v24 = vpop.eup %1389 }
 0xcd9   :  { %513 = vrot.lane.b32.xlu0 %v1390_v24, %s1406_s30 }
 0xd4b   :  { %v514_v25 = vpop.permute.xlu0 %513 }
 0xd4c   :  { %v516_v26 = vmul.f32 %v514_v25, %v499_v18  ;;  %v822_v18 = vld [vmem:[%s1648_s3 + $0x18] sm:$0xff]  ;;  %v812_v25 = vld [vmem:[%s1647_s2 + $0x8] sm:$0xff] }
 0xd4e   :  { %520 = vrot.lane.b32.xlu1 %v516_v26, %s1407_s7  ;;  %v813_v26 = vld [vmem:[%s1647_s2 + $0x10] sm:$0xff] }
 0xdc0   :  { %v521_v27 = vpop.permute.xlu1 %520 }
 0xdc1   :  { %1246 = vmatmul.mubr.msk.f32.vlgmr.msra.gmra.mrb[4].mxu1 %vm30_vm1, %v521_v27  ;;  %v814_v27 = vld [vmem:[%s1647_s2 + $0x18] sm:$0xff] }
 0xdc2   :  { %1347 = vmatpush3.bf16.msra.mxu1 %v1456_v5  ;;  %1267 = vmatprep.mubr.msk.f32.mxu1 %vm1404_vm0, %v1405_v4 }
 0xdc3   :  { %1348 = vmatprep.subr.bf16.mxu1 %v1403_v0 }
 0xdc6   :  { %1350 = vmatpush3.bf16.msra.mxu1 %v1465_v7 }
 0xdc7   :  { %1351 = vmatprep.subr.bf16.mxu1 %v1403_v0 }
 0xe94   :  { %v590_v29 = vpop.f32.mrb[4].mxu1 }
 0xe95   :  { %v594_v30 = vadd.f32 %v1108_v28, %v590_v29  ;;  %v1247_v31 = vpop.f32.mrb[5].mxu1  ;;  %v815_v28 = vld [vmem:[%s1647_s2 + $0x20] sm:$0xff]  ;;  %v816_v29 = vld [vmem:[%s1647_s2 + $0x28] sm:$0xff] }
 0xe96   :  { %v818_v31 = vld [vmem:[%s1647_s2 + $0x38] sm:$0xff] }
 0xe97   :  { %1391 = vtanh.f32 %v594_v30  ;;  %v817_v30 = vld [vmem:[%s1647_s2 + $0x30] sm:$0xff] }
 0xea1   :  { %v1392_v32 = vpop.eup %1391 }
 0xea2   :  { %600 = vrot.lane.b32.xlu0 %v1392_v32, %s1406_s30  ;;  %v596_v5 = vmul.f32 0.5, %v1392_v32 }
 0xea4   :  { %v597_v33 = vadd.f32 0.5, %v596_v5 }
 0xea6   :  { %v598_v7 = vmul.f32 %v597_v33, %v510_v23  ;;  %v1010_v23 = vld [vmem:[#allocation2] sm:$0x1] }
 0xf14   :  { %v601_v34 = vpop.permute.xlu0 %600 }
 0xf15   :  { %v603_v35 = vmul.f32 %v601_v34, %v597_v33 }
 0xf17   :  { %605 = vrot.lane.b32.xlu1 %v603_v35, %s1407_s7 }
 0xf89   :  { %v606_v36 = vpop.permute.xlu1 %605 }
 0xf8a   :  { %v608_v37 = vadd.f32 %v606_v36, %v598_v7 }
 0xf8c   :  { %1393 = vtanh.f32 %v608_v37 }
 0xf96   :  { %v1394_v38 = vpop.eup %1393 }
 0xf97   :  { %611 = vrot.lane.b32.xlu0 %v1394_v38, %s1406_s30 }
0x1009   :  { %v612_v39 = vpop.permute.xlu0 %611 }
0x100a   :  { %v614_v40 = vmul.f32 %v612_v39, %v597_v33 }
0x100c   :  { %618 = vrot.lane.b32.xlu1 %v614_v40, %s1407_s7 }
0x107e   :  { %v619_v41 = vpop.permute.xlu1 %618 }
0x107f   :  { %1257 = vmatmul.mubr.msk.f32.vlgmr.msra.gmra.mrb[6].mxu0 %vm30_vm1, %v619_v41 }
0x1080   :  { %1272 = vmatprep.mubr.msk.f32.mxu0 %vm30_vm1, %v811_v10 }
0x1152   :  { %v688_v43 = vpop.f32.mrb[6].mxu0 }
0x1153   :  { %v692_v44 = vadd.f32 %v1110_v42, %v688_v43  ;;  %v1258_v45 = vpop.f32.mrb[7].mxu0 }
0x1155   :  { %1395 = vtanh.f32 %v692_v44 }
0x115f   :  { %v1396_v46 = vpop.eup %1395 }
0x1160   :  { %698 = vrot.lane.b32.xlu0 %v1396_v46, %s1406_s30  ;;  %v694_v47 = vmul.f32 0.5, %v1396_v46 }
0x1162   :  { %v695_v48 = vadd.f32 0.5, %v694_v47 }
0x1164   :  { %v696_v51 = vmul.f32 %v695_v48, %v608_v37 }
0x11d2   :  { %v699_v49 = vpop.permute.xlu0 %698 }
0x11d3   :  { %v701_v50 = vmul.f32 %v699_v49, %v695_v48 }
0x11d5   :  { %703 = vrot.lane.b32.xlu1 %v701_v50, %s1407_s7 }
0x1247   :  { %v704_v52 = vpop.permute.xlu1 %703 }
0x1248   :  { %v706_v53 = vadd.f32 %v704_v52, %v696_v51 }
0x124a   :  { %1397 = vtanh.f32 %v706_v53 }
0x1254   :  { %v1398_v54 = vpop.eup %1397 }
0x1255   :  { %709 = vrot.lane.b32.xlu0 %v1398_v54, %s1406_s30 }
0x12c7   :  { %v710_v55 = vpop.permute.xlu0 %709 }
0x12c8   :  { %v712_v56 = vmul.f32 %v710_v55, %v695_v48 }
0x12ca   :  { %716 = vrot.lane.b32.xlu1 %v712_v56, %s1407_s7 }
0x133c   :  { %v717_v57 = vpop.permute.xlu1 %716 }
0x133d   :  { %1268 = vmatmul.mubr.msk.f32.vlgmr.msra.gmra.mrb[6].mxu1 %vm30_vm1, %v717_v57 }
0x133e   :  { %1300 = vmatprep.mubr.msk.f32.mxu1 %vm1404_vm0, %v1405_v4 }
0x1410   :  { %v786_v59 = vpop.f32.mrb[6].mxu1 }
0x1411   :  { %v790_v60 = vadd.f32 %v1112_v58, %v786_v59  ;;  %v1269_v61 = vpop.f32.mrb[7].mxu1 }
0x1413   :  { %1399 = vtanh.f32 %v790_v60 }
0x141d   :  { %v1400_v62 = vpop.eup %1399 }
0x141e   :  { %796 = vrot.lane.b32.xlu0 %v1400_v62, %s1406_s30  ;;  %v792_v63 = vmul.f32 0.5, %v1400_v62 }
0x1420   :  { %v793_v1 = vadd.f32 0.5, %v792_v63 }
0x1422   :  { %v794_v6 = vmul.f32 %v793_v1, %v706_v53 }
0x1490   :  { %v797_v2 = vpop.permute.xlu0 %796 }
0x1491   :  { %v799_v3 = vmul.f32 %v797_v2, %v793_v1 }
0x1493   :  { %801 = vrot.lane.b32.xlu1 %v799_v3, %s1407_s7  ;;  %v1009_v3 = vld [vmem:[%s1650_s4] sm:$0x1] }
0x1505   :  { %v802_v8 = vpop.permute.xlu1 %801 }
0x1506   :  { %v804_v4 = vadd.f32 %v802_v8, %v794_v6  ;;  %v1016_v6 = vlaneseq }
0x1508   :  { %1401 = vtanh.f32 %v804_v4  ;;  %v1017_v8 = vshrl.u32 %v1016_v6, 7 }
0x150a   :  { %v1018_v4 = vsub.s32 0, %v1017_v8 }
0x1512   :  { %v1402_v9 = vpop.eup %1401 }
0x1513   :  { %807 = vrot.lane.b32.xlu0 %v1402_v9, %s1406_s30 }
0x1517   :  { %829 = vperm.xlu0 %1369, %v819_v15  }
0x151b   :  { %844 = vperm.xlu0 %1369, %v822_v18  }
0x151f   :  { %854 = vperm.xlu0 %1369, %v824_v20  }
0x1523   :  { %864 = vperm.xlu0 %1369, %v826_v22  }
0x1585   :  { %v808_v11 = vpop.permute.xlu0 %807 }
0x1586   :  { %v810_v12 = vmul.f32 %v808_v11, %v793_v1 }
0x1588   :  { %868 = vrot.lane.b32.xlu1 %v810_v12, %s1407_s7 }
0x158c   :  { %834 = vperm.xlu1 %1370, %v820_v14  }
0x1590   :  { %839 = vperm.xlu1 %1370, %v821_v17  }
0x1594   :  { %849 = vperm.xlu1 %1370, %v823_v19  }
0x1596   :  { %v830_v32 = vpop.permute.xlu0 %829 }
0x1598   :  { %859 = vperm.xlu1 %1370, %v825_v21  }
0x159a   :  { %v845_v33 = vpop.permute.xlu0 %844 }
0x159c   :  { %1013 = vperm.xlu1 %1370, %v1010_v23  }
0x159e   :  { %v855_v43 = vpop.permute.xlu0 %854 }
0x15a2   :  { %v865_v55 = vpop.permute.xlu0 %864 }
0x15fa   :  { %v869_v24 = vpop.permute.xlu1 %868 }
0x15fb   :  { %1270 = vmatprep.subr.msk.mxu0 %vm30_vm1, %v869_v24 }
0x15fc   :  { %1271 = vmatpush3.xpose.msk.msra.mxu0 %vm30_vm1, %v869_v24 }
0x15ff   :  { %1273 = vmatmul.mubr.msk.f32.vlgmr.msra.gmra.mrb[8].mxu0 %vm30_vm1, %v812_v25 }
0x1600   :  { %1275 = vmatprep.mubr.msk.f32.mxu0 %vm30_vm1, %v813_v26 }
0x1603   :  { %1276 = vmatmul.mubr.msk.f32.gmra.mrb[10].mxu0 %vm30_vm1, %v814_v27 }
0x1604   :  { %1278 = vmatprep.mubr.msk.f32.mxu0 %vm30_vm1, %v815_v28 }
0x1607   :  { %1279 = vmatmul.mubr.msk.f32.gmra.mrb[12].mxu0 %vm30_vm1, %v816_v29 }
0x1608   :  { %1281 = vmatprep.mubr.msk.f32.mxu0 %vm30_vm1, %v817_v30 }
0x160b   :  { %1282 = vmatmul.mubr.msk.f32.gmra.mrb[14].mxu0 %vm30_vm1, %v818_v31  ;;  %v835_v5 = vpop.permute.xlu1 %834 }
0x160f   :  { %v840_v35 = vpop.permute.xlu1 %839 }
0x1613   :  { %v850_v46 = vpop.permute.xlu1 %849 }
0x1617   :  { %v860_v58 = vpop.permute.xlu1 %859 }
0x161b   :  { %v1014_v9 = vpop.permute.xlu1 %1013 }
0x161c   :  { %v1019_v10 = vrot.slane %v1014_v9, %v1018_v4 }
0x16d2   :  { %v1274_v34 = vpop.f32.mrb[8].mxu0 }
0x16d3   :  { %v968_v7 = vadd.f32 %v1274_v34, %v835_v5  ;;  %v962_v36 = vpop.f32.mrb[9].mxu0 }
0x16d4   :  { %v963_v37 = vadd.f32 %v962_v36, %v830_v32 }
0x16d5   :  { %v1002_v38 = vmax.f32 %v968_v7, 0.0 }
0x16d6   :  { %v1001_v39 = vmax.f32 %v963_v37, 0.0  ;;  %v1277_v40 = vpop.f32.mrb[10].mxu0 }
0x16d7   :  { %v978_v41 = vadd.f32 %v1277_v40, %v845_v33  ;;  %v972_v42 = vpop.f32.mrb[11].mxu0 }
0x16d8   :  { %v1352_v44 = vpack.c.bf16 %v1002_v38, %v1001_v39  ;;  %v973_v45 = vadd.f32 %v972_v42, %v840_v35 }
0x16d9   :  { %v1004_v47 = vmax.f32 %v978_v41, 0.0 }
0x16da   :  { %v1003_v48 = vmax.f32 %v973_v45, 0.0  ;;  %v1280_v49 = vpop.f32.mrb[12].mxu0  ;;  %1353 = vmatpush3.bf16.msra.mxu1 %v1352_v44 }
0x16db   :  { %v988_v50 = vadd.f32 %v1280_v49, %v855_v43  ;;  %v982_v51 = vpop.f32.mrb[13].mxu0  ;;  %1354 = vmatprep.subr.bf16.mxu1 %v1403_v0 }
0x16dc   :  { %v1355_v52 = vpack.c.bf16 %v1004_v47, %v1003_v48  ;;  %v983_v53 = vadd.f32 %v982_v51, %v850_v46 }
0x16dd   :  { %v1006_v54 = vmax.f32 %v988_v50, 0.0 }
0x16de   :  { %v1005_v56 = vmax.f32 %v983_v53, 0.0  ;;  %v1283_v57 = vpop.f32.mrb[14].mxu0  ;;  %1356 = vmatpush3.bf16.msra.mxu1 %v1355_v52 }
0x16df   :  { %v998_v59 = vadd.f32 %v1283_v57, %v865_v55  ;;  %v992_v60 = vpop.f32.mrb[15].mxu0  ;;  %1357 = vmatprep.subr.bf16.mxu1 %v1403_v0 }
0x16e0   :  { %v1358_v61 = vpack.c.bf16 %v1006_v54, %v1005_v56  ;;  %v993_v62 = vadd.f32 %v992_v60, %v860_v58 }
0x16e1   :  { %v1008_v63 = vmax.f32 %v998_v59, 0.0 }
0x16e2   :  { %v1007_v1 = vmax.f32 %v993_v62, 0.0  ;;  %1359 = vmatpush3.bf16.msra.mxu1 %v1358_v61 }
0x16e3   :  { %1360 = vmatprep.subr.bf16.mxu1 %v1403_v0 }
0x16e4   :  { %v1361_v2 = vpack.c.bf16 %v1008_v63, %v1007_v1 }
0x16e6   :  { %1362 = vmatpush3.bf16.msra.mxu1 %v1361_v2 }
0x16e9   :  { %1301 = vmatmul.mubr.msk.f32.vlgmr.msra.gmra.mrb[8].mxu1 %vm1020_vm2, %v1009_v3 }
0x17bc   :  { %v1090_v11 = vpop.f32.mrb[8].mxu1 }
0x17bd   :  { %v1091_v12 = vadd.f32 %v1090_v11, %v1019_v10  ;;  %v1302_v13 = vpop.f32.mrb[9].mxu1 }
0x17bf   :  { %1095 = vst.msk [vmem:[%s1651_s6] sm:$0x1] %vm1094_vm3, %v1091_v12 }

</bundles_post_ra>
